<compile_context>
chip_gen: v5e
topology: v5e:2x2
jax: 0.10.0
libtpu: 0.0.40
codegen_flags: <defaults>
</compile_context>

<pallas_src>
import functools

import jax
import jax.numpy as jnp
from jax.experimental import pallas as pl
from jax.experimental.pallas import tpu as pltpu

# Tensors up to this many elements take the fused, whole-slab-in-VMEM path.
_FUSED_MAX_ELEMS = 1 << 20            # 4 MiB of f32 -> < ~24 MiB VMEM incl. temps
_VMEM_LIMIT = 48 * 1024 * 1024        # stays under v7x's 64 MiB physical VMEM
_TWO_PASS_COLS = 512                  # lane-dense slab width for the tiled path
_TWO_PASS_ROW_MULT = 32               # sublane multiple valid for f32/bf16/int8 tiling


# --------------------------------------------------------------------------
# Fused kernels (whole tensor resident in VMEM): read once, tanh once.
# --------------------------------------------------------------------------

def _fused_tanh_quant_kernel(x_ref, out_ref, *, k, n):
    """w_bit in 2..8: w = tanh(x)/max|tanh(x)|; q = round(w*n)*(1/n) (or sign for k==1)."""
    t = jnp.tanh(x_ref[...].astype(jnp.float32))
    m = jnp.max(jnp.abs(t))                 # single cross-lane (XLU) reduce
    w = t / m                               # keep divide: bit-faithful round() inputs
    if k == 1:
        q = jnp.sign(w)
    else:
        q = jnp.round(w * n) * (1.0 / n)    # post-round divide folded into a multiply
    out_ref[...] = q.astype(out_ref.dtype)


def _fused_binary_kernel(x_ref, out_ref, *, n, inv_count):
    """w_bit == 1 branch.  Faithful to the PyTorch reference: uniform_quantize(k=0)
    gives n = 0, so round(x*0)/0 -> NaN everywhere, exactly as torch produces."""
    xf = x_ref[...].astype(jnp.float32)
    e = jnp.sum(jnp.abs(xf)) * inv_count    # padded zeros contribute 0; divide by true size
    q = jnp.round((xf / e) * n) / n
    out_ref[...] = ((q + 1.0) * 0.5 * e).astype(out_ref.dtype)


# --------------------------------------------------------------------------
# Two-pass kernels for tensors too large to keep resident in VMEM.
# --------------------------------------------------------------------------

def _max_abs_tanh_reduce_kernel(x_ref, out_ref, acc_ref):
    i = pl.program_id(0)

    @pl.when(i == 0)
    def _():
        acc_ref[...] = jnp.zeros_like(acc_ref)

    # Pure elementwise (VPU) accumulation per step.
    acc_ref[...] = jnp.maximum(acc_ref[...],
                               jnp.abs(jnp.tanh(x_ref[...].astype(jnp.float32))))

    @pl.when(i == pl.num_programs(0) - 1)
    def _():
        # Single expensive cross-lane reduce, done exactly once.
        out_ref[...] = jnp.broadcast_to(jnp.max(acc_ref[...]), (1, 1))


def _sum_abs_reduce_kernel(x_ref, out_ref, acc_ref):
    i = pl.program_id(0)

    @pl.when(i == 0)
    def _():
        acc_ref[...] = jnp.zeros_like(acc_ref)

    acc_ref[...] = acc_ref[...] + jnp.abs(x_ref[...].astype(jnp.float32))

    @pl.when(i == pl.num_programs(0) - 1)
    def _():
        out_ref[...] = jnp.broadcast_to(jnp.sum(acc_ref[...]), (1, 1))


def _tanh_quant_apply_kernel(m_ref, x_ref, out_ref, *, k, n):
    """Second pass: m_ref is the (1,1) f32 scale max|tanh(x)| held in SMEM."""
    m = m_ref[0, 0]
    w = jnp.tanh(x_ref[...].astype(jnp.float32)) / m
    if k == 1:
        q = jnp.sign(w)
    else:
        q = jnp.round(w * n) * (1.0 / n)
    out_ref[...] = q.astype(out_ref.dtype)


def _binary_apply_kernel(e_ref, x_ref, out_ref, *, n):
    """Second pass of the w_bit == 1 branch (n == 0 -> NaN, faithful to reference)."""
    e = e_ref[0, 0]
    xf = x_ref[...].astype(jnp.float32)
    q = jnp.round((xf / e) * n) / n
    out_ref[...] = ((q + 1.0) * 0.5 * e).astype(out_ref.dtype)


# --------------------------------------------------------------------------
# pallas_call wrappers
# --------------------------------------------------------------------------

def _fused_call(x2d, kernel, out_dtype):
    r, c = x2d.shape
    return pl.pallas_call(
        kernel,
        out_shape=jax.ShapeDtypeStruct((r, c), out_dtype),
        compiler_params=pltpu.CompilerParams(vmem_limit_bytes=_VMEM_LIMIT),
    )(x2d)


def _reduce_call(x2d, kernel, block_rows):
    r, c = x2d.shape
    # TODO(synk): on v7x a leading core-parallel axis (per-TC partial reductions)
    # could roughly halve this pass; kept single-core "arbitrary" for simplicity.
    return pl.pallas_call(
        kernel,
        out_shape=jax.ShapeDtypeStruct((1, 1), jnp.float32),
        grid=(r // block_rows,),
        in_specs=[pl.BlockSpec((block_rows, c), lambda i: (i, 0))],
        out_specs=pl.BlockSpec((1, 1), lambda i: (0, 0)),
        scratch_shapes=[pltpu.VMEM((block_rows, c), jnp.float32)],
        compiler_params=pltpu.CompilerParams(
            dimension_semantics=("arbitrary",),
            vmem_limit_bytes=_VMEM_LIMIT),
    )(x2d)


def _apply_call(scale, x2d, kernel, block_rows, out_dtype):
    r, c = x2d.shape
    return pl.pallas_call(
        kernel,
        out_shape=jax.ShapeDtypeStruct((r, c), out_dtype),
        grid=(r // block_rows,),
        in_specs=[pl.BlockSpec(memory_space=pltpu.MemorySpace.SMEM),
                  pl.BlockSpec((block_rows, c), lambda i: (i, 0))],
        out_specs=pl.BlockSpec((block_rows, c), lambda i: (i, 0)),
        compiler_params=pltpu.CompilerParams(
            dimension_semantics=("parallel",),
            vmem_limit_bytes=_VMEM_LIMIT),
    )(scale, x2d)


# --------------------------------------------------------------------------
# Layout helpers
# --------------------------------------------------------------------------

def _fused_slab(n):
    """Widest lane-dense column count that needs no padding (prefer >= 8 rows)."""
    candidates = (4096, 2048, 1024, 512, 256, 128)
    for c in candidates:
        if n % c == 0 and n >= 8 * c:
            return c, 0
    for c in candidates:
        if n % c == 0:
            return c, 0
    c = 512
    return c, (-n) % c


def _two_pass_slab(n):
    c = _TWO_PASS_COLS
    pad = (-n) % (_TWO_PASS_ROW_MULT * c)   # rows multiple of 32 -> tiling-safe for any dtype
    return c, pad


def _pick_block_rows(r):
    for br in (2048, 1024, 512, 256, 128, 64, 32):   # <= 4 MiB f32 blocks at c=512
        if r % br == 0:
            return br
    return 32  # unreachable: r is a multiple of 32


# --------------------------------------------------------------------------
# Module
# --------------------------------------------------------------------------

class WeightQuantizeFn:
    """Pallas TPU implementation of weight_quantize_fn.forward."""

    def __init__(self, w_bit):
        assert w_bit <= 8 or w_bit == 32
        self.w_bit = w_bit

    def __call__(self, x):
        if self.w_bit == 32:
            return x  # identity branch

        orig_shape = x.shape
        out_dtype = x.dtype
        flat = x.reshape(-1)
        n_elems = flat.shape[0]

        fused = n_elems <= _FUSED_MAX_ELEMS
        c, pad = _fused_slab(n_elems) if fused else _two_pass_slab(n_elems)
        if pad:
            # zero padding is reduction-safe: |tanh(0)| = 0 and |0| = 0
            flat = jnp.pad(flat, (0, pad))
        x2d = flat.reshape(-1, c)

        if self.w_bit == 1:
            nq = float(2 ** (self.w_bit - 1) - 1)  # == 0.0, faithful (NaN output)
            if fused:
                out2d = _fused_call(
                    x2d,
                    functools.partial(_fused_binary_kernel, n=nq,
                                      inv_count=float(1.0 / n_elems)),
                    out_dtype)
            else:
                br = _pick_block_rows(x2d.shape[0])
                s = _reduce_call(x2d, _sum_abs_reduce_kernel, br)
                e = (s * jnp.float32(1.0 / n_elems)).astype(jnp.float32)
                out2d = _apply_call(e, x2d,
                                    functools.partial(_binary_apply_kernel, n=nq),
                                    br, out_dtype)
        else:
            k = self.w_bit - 1
            nq = float(2 ** k - 1)
            if fused:
                out2d = _fused_call(
                    x2d,
                    functools.partial(_fused_tanh_quant_kernel, k=k, n=nq),
                    out_dtype)
            else:
                br = _pick_block_rows(x2d.shape[0])
                m = _reduce_call(x2d, _max_abs_tanh_reduce_kernel, br)
                out2d = _apply_call(m, x2d,
                                    functools.partial(_tanh_quant_apply_kernel, k=k, n=nq),
                                    br, out_dtype)

        out = out2d.reshape(-1)
        if pad:
            out = out[:n_elems]
        return out.reshape(orig_shape)


# --------------------------------------------------------------------------
# Pure-JAX reference (forward semantics of the PyTorch module) for verification
# --------------------------------------------------------------------------

def _reference(x, w_bit):
    if w_bit == 32:
        return x
    if w_bit == 1:
        E = jnp.mean(jnp.abs(x))
        n = float(2 ** (w_bit - 1) - 1)
        q = jnp.round((x / E) * n) / n
        return (q + 1.0) / 2.0 * E
    w = jnp.tanh(x)
    w = w / jnp.max(jnp.abs(w))
    k = w_bit - 1
    if k == 1:
        return jnp.sign(w)
    n = float(2 ** k - 1)
    return jnp.round(w * n) / n


if __name__ == "__main__":
    key = jax.random.PRNGKey(0)
    # small conv-style 4D weight tensor
    x = jax.random.normal(key, (2, 4, 16, 16), dtype=jnp.float32)

    w_bit = 4  # primary use case: 4-bit quantization
    quant = WeightQuantizeFn(w_bit)

    out = jax.block_until_ready(quant(x))

    ref = _reference(x, w_bit)
    assert out.shape == x.shape and out.dtype == x.dtype
    assert jnp.allclose(out, ref, atol=1e-6, rtol=1e-6), "mismatch vs pure-JAX reference"

    print("KERNEL_OK")
</pallas_src>

<mosaic_0001>
module attributes {stable_mosaic.version = 11 : i64} {
  func.func @_fused_tanh_quant_kernel(%arg0: memref<8x256xf32, #tpu.memory_space<vmem>>, %arg1: memref<8x256xf32, #tpu.memory_space<vmem>>) attributes {dimension_semantics = [], scalar_prefetch = 0 : i64, scratch_operands = 0 : i64, tpu.core_type = #tpu.core_type<tc>} {
    %c0 = arith.constant 0 : index
    %c0_0 = arith.constant 0 : index
    %0 = vector.load %arg0[%c0, %c0_0] : memref<8x256xf32, #tpu.memory_space<vmem>>, vector<8x256xf32>
    %1 = math.tanh %0 : vector<8x256xf32>
    %2 = math.absf %1 : vector<8x256xf32>
    %3 = vector.shape_cast %2 : vector<8x256xf32> to vector<1x8x256xf32>
    %cst = arith.constant dense<0xFF800000> : vector<1xf32>
    %4 = vector.multi_reduction <maximumf>, %3, %cst [1, 2] : vector<1x8x256xf32> to vector<1xf32>
    %5 = vector.shape_cast %4 : vector<1xf32> to vector<1x1x1xf32>
    %6 = vector.extract %5[0, 0, 0] : f32 from vector<1x1x1xf32>
    %7 = vector.broadcast %6 : f32 to vector<8x256xf32>
    %8 = arith.divf %1, %7 : vector<8x256xf32>
    %cst_1 = arith.constant 7.000000e+00 : f32
    %9 = vector.broadcast %cst_1 : f32 to vector<8x256xf32>
    %10 = arith.mulf %8, %9 : vector<8x256xf32>
    %11 = math.roundeven %10 : vector<8x256xf32>
    %cst_2 = arith.constant 0.142857149 : f32
    %12 = vector.broadcast %cst_2 : f32 to vector<8x256xf32>
    %13 = arith.mulf %11, %12 : vector<8x256xf32>
    %c0_3 = arith.constant 0 : index
    %c0_4 = arith.constant 0 : index
    %14 = vector.load %arg1[%c0_3, %c0_4] : memref<8x256xf32, #tpu.memory_space<vmem>>, vector<8x256xf32>
    tpu.vector_store %arg1[%c0_3, %c0_4], %13 {strides = array<i32>} : memref<8x256xf32, #tpu.memory_space<vmem>>, vector<8x256xf32>,
    return
  }
}

</mosaic_0001>

<bundles_post_ra>
// kernel: tpu_custom_call.1
= control target key start
LH: loop header
LB: loop body
LE: loop exit
PB: predicated region body
PF: predicated region fallthrough
CT: control target
= control target key end

     0   :  { %6 = vsyncpa [#allocation3], 0  ;;  %s177_s0 = inlined_call_operand.hbm [shape: f32[8,256], index: 0, kind: input, shape index: {}]   ;;  %s178_s1 = inlined_call_operand.hbm [shape: f32[8,256], index: 1, kind: output, shape index: {}]  }
   0x1   :  { %7 = vsyncpa [#allocation4], 0  ;;  %s13_s8 = sshll.u32 %s177_s0, 4  ;;  %s159_s9 = smov [#allocation2]   ;;  %s14_s8 = int_to_ptr.hbm [resolvable:$true] %s13_s8 }
   0x2   :  { %s15_s10 = sshll.u32 %s159_s9, 4  ;;  %s16_s10 = int_to_ptr.vmem [resolvable:$true] %s15_s10 }
   0x3   :  { %18 = dma.hbm_to_vmem [thread:$0]  %s14_s8, 256, %s16_s10, [#allocation3]  }
   0x4   :  { %155 = dma.done.wait [#allocation3], 256  }
   0x5   :  { %156 = vsyncadd [#allocation3], 4294967040  ;;  %v23_v0 = vld [vmem:[#allocation2] sm:$0xff]  ;;  %v24_v1 = vld [vmem:[#allocation2 + $0x8] sm:$0xff]  ;;  %s160_s11 = smov [#allocation5]   ;;  %s71_s15 = sshll.u32 %s178_s1, 4  ;;  %s72_s15 = int_to_ptr.hbm [resolvable:$true] %s71_s15 }
   0x6   :  { %101 = vtanh.f32 %v23_v0  ;;  %s69_s12 = sshll.u32 %s160_s11, 4  ;;  %s70_s12 = int_to_ptr.vmem [resolvable:$true] %s69_s12 }
   0x7   :  { %103 = vtanh.f32 %v24_v1 }
   0xc   :  { %v102_v2 = vpop.eup %101 }
   0xd   :  { %v104_v3 = vpop.eup %103  ;;  %v27_v4 = vand.u32 2147483647, %v102_v2 }
   0xe   :  { %v28_v5 = vand.u32 2147483647, %v104_v3 }
  0x10   :  { %v29_v6 = vmax.f32 %v27_v4, %v28_v5 }
  0x12   :  { %30 = vmax.xlane.f32.xlu0 %v29_v6 }
  0x85   :  { %v31_v7 = vpop.xlane.xlu0 %30 }
  0x86   :  { %v32_v8 = vrot.slane %v31_v7, 4 }
  0x88   :  { %v33_v9 = vmax.f32 %v31_v7, %v32_v8 }
  0x8a   :  { %v34_v10 = vrot.slane %v33_v9, 2 }
  0x8c   :  { %v35_v11 = vmax.f32 %v33_v9, %v34_v10 }
  0x8e   :  { %v36_v12 = vrot.slane %v35_v11, 1 }
  0x90   :  { %v37_v13 = vmax.f32 %v35_v11, %v36_v12 }
  0x92   :  { %81 = vpush %v37_v13 }
  0xc3   :  { %s82_s0 = spop %81 }
  0xc4   :  { %v39_v14 = vstv %s82_s0 }
  0xc5   :  { %105 = vrcp.f32 %v39_v14  ;;  %v51_v18 = vand.u32 2147483648, %v39_v14  ;;  %v49_v20 = vand.u32 2147483647, %v39_v14  ;;  %vm45_vm1 = vweird.f32 %v39_v14 }
  0xc7   :  { %v52_v22 = vor.u32 1.1754944e-38, %v51_v18  ;;  %vm50_vm3 = vcmp.eq.f32.partialorder %v49_v20, 8.507059e+37 }
  0xcb   :  { %v106_v15 = vpop.eup %105 }
  0xcc   :  { %v41_v16 = vmul.f32 %v106_v15, %v39_v14  ;;  %vm46_vm0 = vweird.f32 %v106_v15 }
  0xcd   :  { %vm47_vm2 = vmor %vm45_vm1, %vm46_vm0 }
  0xce   :  { %v42_v17 = vsub.f32 1.0, %v41_v16 }
  0xd0   :  { %v43_v19 = vmul.f32 %v106_v15, %v42_v17 }
  0xd2   :  { %v44_v21 = vadd.f32 %v106_v15, %v43_v19 }
  0xd4   :  { %v48_v23 = vsel %vm47_vm2, %v106_v15, %v44_v21 }
  0xd5   :  { %v53_v24 = vsel %vm50_vm3, %v52_v22, %v48_v23 }
  0xd6   :  { %v54_v25 = vmul.f32 %v102_v2, %v53_v24  ;;  %v55_v26 = vmul.f32 %v104_v3, %v53_v24 }
  0xd8   :  { %v56_v27 = vmul.f32 7.0, %v54_v25  ;;  %v57_v28 = vmul.f32 7.0, %v55_v26 }
  0xda   :  { %v85_v29 = vcvt.f32.s32 %v56_v27  ;;  %v93_v30 = vcvt.f32.s32 %v57_v28  ;;  %v83_v32 = vand.u32 2147483647, %v56_v27  ;;  %v88_v35 = vand.u32 2147483648, %v56_v27 }
  0xdb   :  { %v91_v36 = vand.u32 2147483647, %v57_v28  ;;  %v96_v38 = vand.u32 2147483648, %v57_v28 }
  0xdc   :  { %v86_v31 = vcvt.s32.f32 %v85_v29  ;;  %v94_v33 = vcvt.s32.f32 %v93_v30  ;;  %vm84_vm4 = vcmp.lt.f32.partialorder %v83_v32, 8388608.0 }
  0xdd   :  { %vm92_vm5 = vcmp.lt.f32.partialorder %v91_v36, 8388608.0 }
  0xde   :  { %v87_v34 = vand.u32 2147483647, %v86_v31  ;;  %v95_v37 = vand.u32 2147483647, %v94_v33 }
  0xe0   :  { %v89_v39 = vor.u32 %v88_v35, %v87_v34  ;;  %v97_v40 = vor.u32 %v96_v38, %v95_v37 }
  0xe2   :  { %v90_v41 = vsel %vm84_vm4, %v89_v39, %v56_v27  ;;  %v98_v42 = vsel %vm92_vm5, %v97_v40, %v57_v28 }
  0xe3   :  { %v60_v43 = vmul.f32 0.14285715, %v90_v41  ;;  %v61_v44 = vmul.f32 0.14285715, %v98_v42 }
  0xe5   :  { %62 = vst [vmem:[#allocation5] sm:$0xff] %v60_v43 }
  0xe6   :  { %63 = vst [vmem:[#allocation5 + $0x8] sm:$0xff] %v61_v44 }
  0xe7   :  { %74 = dma.vmem_to_hbm [thread:$0]  %s70_s12, 256, %s72_s15, [#allocation4]  }
  0xe8   :  { %157 = dma.done.wait [#allocation4], 256  }
  0xe9   :  { %158 = vsyncadd [#allocation4], 4294967040 }
  0xea   :  { %79 = vsyncpa [#allocation3], 1 }
  0xeb   :  { %80 = vsyncpa [#allocation4], 1 }

</bundles_post_ra>
